<compile_context>
chip_gen: v7x
topology: tpu7x:2x2x1
jax: 0.10.0
libtpu: 0.0.40
codegen_flags: <defaults>
</compile_context>

<pallas_src>
import functools

import jax
import jax.numpy as jnp
from jax.experimental import pallas as pl
from jax.experimental.pallas import tpu as pltpu

# Below this many bytes, skip the kernel entirely (launch overhead dominates).
_MIN_KERNEL_BYTES = 1 << 20        # 1 MiB
# Above this many bytes, insist on >= _MIN_GRID_STEPS so DMA/compute overlap.
_MIN_DEPTH_BYTES = 256 << 10       # 256 KiB
_MIN_GRID_STEPS = 4


def _clip_kernel(x_ref, o_ref, *, budget):
    # Elementwise clamp on the whole (tr, tl) VMEM tile; budget is an immediate.
    o_ref[...] = jnp.clip(x_ref[...], -budget, budget)


def _pick_tiles():
    """Per-generation block sizes (element counts)."""
    row_tile, lane_tile = 512, 1024        # 2 MiB f32 block: safe everywhere (v5e 16 MiB scoped VMEM)
    try:
        kind = jax.devices()[0].device_kind.lower()
    except Exception:                      # no device visible -> stay conservative
        return row_tile, lane_tile
    if ("v6" in kind) or ("v7" in kind) or ("7x" in kind):
        lane_tile = 2048                   # 4 MiB block: 16 MiB double-buffered, fits v6e/v7x 32 MiB scoped default
    return row_tile, lane_tile


def _lane_dense_2d(offset, lane_tile):
    """Present the [B, C, K] tensor as a lane-dense 2D slab."""
    B, C, K = offset.shape
    n = B * C * K
    if K % 128 == 0:
        return offset.reshape(B * C, K)    # free merge of major dims, lane dim unchanged
    # Ragged K: element order is irrelevant for an elementwise op.  Prefer a
    # flat factorization n = rows * lw with lw a multiple of 128 so output
    # stores are unmasked lane-dense vst.  (XLA may relayout for this reshape;
    # it pays off when the ragged-K path is hot / the tensor is large.)
    start = min(lane_tile, (n // 128) * 128)
    for lw in range(start, 127, -128):
        if n % lw == 0:
            return offset.reshape(n // lw, lw)
    return offset.reshape(B * C, K)        # fallback: masked tail lanes


def _choose_blocks(R, L, row_tile, lane_tile, itemsize):
    """Pick (tr, tl): big tiles, but enough grid steps to pipeline."""
    tr = R if R <= row_tile else row_tile
    tl = L if L <= lane_tile else lane_tile

    def steps(a, b):
        return pl.cdiv(R, a) * pl.cdiv(L, b)

    if R * L * itemsize >= _MIN_DEPTH_BYTES:
        while steps(tr, tl) < _MIN_GRID_STEPS:
            new_tr = max(8, (tr // 2) // 8 * 8)        # stay a multiple of 8
            new_tl = max(128, (tl // 2) // 128 * 128)  # stay a multiple of 128
            if new_tr < tr:
                tr = new_tr                            # split rows first: keeps stores lane-dense
            elif new_tl < tl:
                tl = new_tl
            else:
                break
    return tr, tl


def clip_offset_linf(offset: jax.Array, budget: float, *,
                     donate_offset: bool = False,
                     force_kernel: bool = False) -> jax.Array:
    """Clip every point offset to the l_inf ball of radius `budget`.

    Args:
        offset: [B, 3, K] float array of per-point offsets.
        budget: scalar perturbation budget (static Python float).
        donate_offset: alias input->output inside the kernel (pair with
            jax.jit(..., donate_argnums=...) so the buffer is actually reused).
        force_kernel: skip the small-input fast path (testing / benchmarking).

    Returns:
        [B, 3, K] array with every element clamped to [-budget, budget].
    """
    budget = float(budget)
    orig_shape = offset.shape
    nbytes = offset.size * offset.dtype.itemsize

    # Small-input fast path: XLA-fused clip beats any pallas_call launch.
    if nbytes < _MIN_KERNEL_BYTES and not force_kernel:
        return jnp.clip(offset, -budget, budget)

    row_tile, lane_tile = _pick_tiles()
    x2d = _lane_dense_2d(offset, lane_tile)
    R, L = x2d.shape
    tr, tl = _choose_blocks(R, L, row_tile, lane_tile, offset.dtype.itemsize)
    grid = (pl.cdiv(R, tr), pl.cdiv(L, tl))

    kernel = functools.partial(_clip_kernel, budget=budget)
    out2d = pl.pallas_call(
        kernel,
        out_shape=jax.ShapeDtypeStruct((R, L), offset.dtype),
        grid_spec=pl.GridSpec(
            grid=grid,
            in_specs=[pl.BlockSpec((tr, tl), lambda i, j: (i, j))],
            out_specs=pl.BlockSpec((tr, tl), lambda i, j: (i, j)),
        ),
        compiler_params=pltpu.CompilerParams(
            dimension_semantics=("parallel", "parallel"),
        ),
        input_output_aliases=({0: 0} if donate_offset else {}),
    )(x2d)

    # TODO(synk): if the offsets are produced/consumed by another kernel or XLA
    # fusion (optimizer step, point transform, loss), fuse this clamp there and
    # delete this standalone HBM read+write pass entirely.
    return out2d.reshape(orig_shape)


if __name__ == "__main__":
    key = jax.random.PRNGKey(0)
    budget = 0.18
    k1, k2, k3, k4 = jax.random.split(key, 4)

    # Case 1: typical shape, K a multiple of 128 -> lane-dense (B*3, K) slab.
    offset = jax.random.normal(k1, (2, 3, 1024), dtype=jnp.float32) * 0.5
    out = jax.block_until_ready(clip_offset_linf(offset, budget, force_kernel=True))
    ref = jnp.clip(offset, -budget, budget)
    assert out.shape == offset.shape and out.dtype == offset.dtype
    assert jnp.allclose(out, ref), "mismatch (K=1024, kernel path)"

    # Case 2: small-input fast path (no pallas launch).
    out_fast = jax.block_until_ready(clip_offset_linf(offset, budget))
    assert jnp.allclose(out_fast, ref), "mismatch (fast path)"

    # Case 3: ragged K with a clean lane-dense factorization
    # (N = 16*3*200 = 9600 = 15 * 640 lanes).
    offset3 = jax.random.normal(k2, (16, 3, 200), dtype=jnp.float32) * 0.5
    out3 = jax.block_until_ready(clip_offset_linf(offset3, budget, force_kernel=True))
    assert jnp.allclose(out3, jnp.clip(offset3, -budget, budget)), "mismatch (ragged, flattened)"

    # Case 4: ragged K with no clean factorization -> masked-tail fallback.
    offset4 = jax.random.normal(k3, (2, 3, 200), dtype=jnp.float32) * 0.5
    out4 = jax.block_until_ready(clip_offset_linf(offset4, budget, force_kernel=True))
    assert jnp.allclose(out4, jnp.clip(offset4, -budget, budget)), "mismatch (ragged, masked)"

    # Case 5: medium slab -> exercises the >=4-step pipeline-depth split and
    # the input->output alias.
    offset5 = jax.random.normal(k4, (8, 3, 4096), dtype=jnp.float32) * 0.5
    ref5 = jnp.clip(offset5, -budget, budget)
    out5 = jax.block_until_ready(
        clip_offset_linf(offset5, budget, force_kernel=True, donate_offset=True))
    assert jnp.allclose(out5, ref5), "mismatch (aliased / depth-split path)"

    print("KERNEL_OK")
</pallas_src>

<mosaic_0001>
module attributes {stable_mosaic.version = 11 : i64} {
  func.func @_clip_kernel(%arg0: i32, %arg1: i32, %arg2: memref<6x1024xf32, #tpu.memory_space<vmem>>, %arg3: memref<6x1024xf32, #tpu.memory_space<vmem>>) attributes {dimension_semantics = [#tpu.dimension_semantics<parallel>, #tpu.dimension_semantics<parallel>], iteration_bounds = array<i64: 1, 1>, scalar_prefetch = 0 : i64, scratch_operands = 0 : i64, tpu.core_type = #tpu.core_type<tc>, window_params = [{transform_indices = @transform_0, window_bounds = array<i64: 6, 1024>}, {transform_indices = @transform_1, window_bounds = array<i64: 6, 1024>}]} {
    %c0 = arith.constant 0 : index
    %c0_0 = arith.constant 0 : index
    %0 = vector.load %arg2[%c0, %c0_0] : memref<6x1024xf32, #tpu.memory_space<vmem>>, vector<6x1024xf32>
    %cst = arith.constant -1.800000e-01 : f32
    %cst_1 = arith.constant 1.800000e-01 : f32
    %1 = vector.broadcast %cst : f32 to vector<6x1024xf32>
    %2 = arith.maximumf %1, %0 : vector<6x1024xf32>
    %3 = vector.broadcast %cst_1 : f32 to vector<6x1024xf32>
    %4 = arith.minimumf %3, %2 : vector<6x1024xf32>
    %c0_2 = arith.constant 0 : index
    %c0_3 = arith.constant 0 : index
    %5 = vector.load %arg3[%c0_2, %c0_3] : memref<6x1024xf32, #tpu.memory_space<vmem>>, vector<6x1024xf32>
    tpu.vector_store %arg3[%c0_2, %c0_3], %4 {strides = array<i32>} : memref<6x1024xf32, #tpu.memory_space<vmem>>, vector<6x1024xf32>,
    return
  }
  func.func @transform_0(%arg0: i32, %arg1: i32) -> (i32, i32) {
    %c0_i32 = arith.constant 0 : i32
    return %arg0, %arg1 : i32, i32
  }
  func.func @transform_1(%arg0: i32, %arg1: i32) -> (i32, i32) {
    %c0_i32 = arith.constant 0 : i32
    return %arg0, %arg1 : i32, i32
  }
}

</mosaic_0001>

<bundles_post_ra>
// kernel: tpu_custom_call.1
= control target key start
LH: loop header
LB: loop body
LE: loop exit
PB: predicated region body
PF: predicated region fallthrough
CT: control target
= control target key end

     0   :  { %6 = vsyncpa [#allocation3], 0  ;;  %s162_s0 = inlined_call_operand.hbm [shape: f32[6,1024], index: 0, kind: input, shape index: {}]   ;;  %s163_s1 = inlined_call_operand.hbm [shape: f32[6,1024], index: 1, kind: output, shape index: {}]  }
   0x1   :  { %7 = vsyncpa [#allocation4], 0  ;;  %s126_s6 = smov [#allocation2]   ;;  %s78_s10 = scalar_lea.hbm %s162_s0, 1024 }
   0x2   :  { %s14_s7 = sshll.u32 %s126_s6, 4  ;;  %p79_p0 = scmp.ne.s32.totalorder %s162_s0, %s78_s10  ;;  %s15_s7 = int_to_ptr.vmem [resolvable:$true] %s14_s7 }
   0x3   :  { %p82_p1 = scmp.lt.u32.totalorder %s78_s10, %s162_s0 }
   0x5   :  { %p84_p2 = pnand %p82_p1, %p79_p0 }
   0x7   :  { %87 = shalt.err (!%p84_p2)
}
   0x8   :  { %s88_s15 = scalar_lea.vmem %s15_s7, 1024  ;;  %p93_p4 = scmp.lt.s32.totalorder %s15_s7, %s15_s7 }
   0x9   :  { %p89_p3 = scmp.ne.s32.totalorder %s15_s7, %s88_s15  ;;  %p94_p5 = scmp.lt.s32.totalorder %s88_s15, %s88_s15 }
   0xb   :  { %p95_p6 = por %p94_p5, %p93_p4 }
   0xd   :  { %p96_p7 = pnand %p95_p6, %p89_p3 }
   0xf   :  { %99 = shalt.err (!%p96_p7)
}
  0x10   :  { %17 = dma.hbm_to_vmem [thread:$0]  %s162_s0, 1024, %s15_s7, [#allocation3]  }
  0x11   :  { %122 = dma.done.wait [#allocation3], 1024  }
  0x12   :  { %123 = vsyncadd [#allocation3], 4294966272  ;;  %s127_s18 = smov [#allocation5]   ;;  %v21_v0 = vld [vmem:[#allocation2] sm:$0x3f] }
  0x13   :  { %s59_s19 = sshll.u32 %s127_s18, 4  ;;  %v22_v1 = vld [vmem:[#allocation2 + $0x8] sm:$0x3f]  ;;  %v23_v2 = vld [vmem:[#allocation2 + $0x10] sm:$0x3f]  ;;  %s60_s19 = int_to_ptr.vmem [resolvable:$true] %s59_s19 }
  0x14   :  { %v68_v3 = vclamps-f32 %v21_v0, 0.18  ;;  %v69_v4 = vclamps-f32 %v22_v1, 0.18  ;;  %v70_v5 = vclamps-f32 %v23_v2, 0.18  ;;  %p105_p9 = scmp.lt.s32.totalorder %s60_s19, %s60_s19 }
  0x15   :  { %v24_v6 = vld [vmem:[#allocation2 + $0x18] sm:$0x3f]  ;;  %v25_v7 = vld [vmem:[#allocation2 + $0x20] sm:$0x3f]  ;;  %v26_v8 = vld [vmem:[#allocation2 + $0x28] sm:$0x3f] }
  0x16   :  { %45 = vst [vmem:[#allocation5] sm:$0x3f] %v68_v3  ;;  %46 = vst [vmem:[#allocation5 + $0x8] sm:$0x3f] %v69_v4  ;;  %v71_v9 = vclamps-f32 %v24_v6, 0.18 }
  0x17   :  { %47 = vst [vmem:[#allocation5 + $0x10] sm:$0x3f] %v70_v5  ;;  %v72_v10 = vclamps-f32 %v25_v7, 0.18  ;;  %v73_v11 = vclamps-f32 %v26_v8, 0.18 }
  0x18   :  { %v27_v12 = vld [vmem:[#allocation2 + $0x30] sm:$0x3f]  ;;  %v28_v13 = vld [vmem:[#allocation2 + $0x38] sm:$0x3f]  ;;  %48 = vst [vmem:[#allocation5 + $0x18] sm:$0x3f] %v71_v9 }
  0x19   :  { %49 = vst [vmem:[#allocation5 + $0x20] sm:$0x3f] %v72_v10  ;;  %50 = vst [vmem:[#allocation5 + $0x28] sm:$0x3f] %v73_v11  ;;  %v74_v14 = vclamps-f32 %v27_v12, 0.18 }
  0x1a   :  { %v75_v15 = vclamps-f32 %v28_v13, 0.18  ;;  %s100_s0 = scalar_lea.vmem %s60_s19, 1024 }
  0x1b   :  { %51 = vst [vmem:[#allocation5 + $0x30] sm:$0x3f] %v74_v14  ;;  %p101_p8 = scmp.ne.s32.totalorder %s60_s19, %s100_s0  ;;  %p106_p10 = scmp.lt.s32.totalorder %s100_s0, %s100_s0 }
  0x1c   :  { %52 = vst [vmem:[#allocation5 + $0x38] sm:$0x3f] %v75_v15 }
  0x1d   :  { %p107_p11 = por %p106_p10, %p105_p9 }
  0x1f   :  { %p108_p12 = pnand %p107_p11, %p101_p8 }
  0x21   :  { %111 = shalt.err (!%p108_p12)
}
  0x22   :  { %s112_s22 = scalar_lea.hbm %s163_s1, 1024 }
  0x23   :  { %p113_p13 = scmp.ne.s32.totalorder %s163_s1, %s112_s22  ;;  %p116_p0 = scmp.lt.u32.totalorder %s112_s22, %s163_s1 }
  0x25   :  { %p118_p1 = pnand %p116_p0, %p113_p13 }
  0x27   :  { %121 = shalt.err (!%p118_p1)
}
  0x28   :  { %62 = dma.vmem_to_hbm [thread:$0]  %s60_s19, 1024, %s163_s1, [#allocation4]  }
  0x29   :  { %124 = dma.done.wait [#allocation4], 1024  }
  0x2a   :  { %125 = vsyncadd [#allocation4], 4294966272 }
  0x2b   :  { %66 = vsyncpa [#allocation3], 1 }
  0x2c   :  { %67 = vsyncpa [#allocation4], 1 }

</bundles_post_ra>
